<compile_context>
chip_gen: v5e
topology: v5e:2x2
jax: 0.10.0
libtpu: 0.0.40
codegen_flags: <defaults>
</compile_context>

<pallas_src>
import math
import jax
import jax.numpy as jnp
from jax.experimental import pallas as pl
from jax.experimental.pallas import tpu as pltpu


def _attention_kernel(k_ref, qx_ref, wk_ref, bk_ref, wp_ref, bp_ref, o_ref):
    Bt, KL, E = k_ref.shape
    H = wk_ref.shape[1]
    OD = wp_ref.shape[1]

    # One fused key projection for the whole batch tile: (Bt*KL, E) @ (E, H) on the MXU.
    km = k_ref[...].reshape(Bt * KL, E)
    kx = jnp.dot(km, wk_ref[...], preferred_element_type=jnp.float32) + bk_ref[...]
    kx3 = kx.reshape(Bt, KL, H)

    # dot_product score with the single pre-projected query row (q_len == 1):
    # VPU multiply + lane reduce instead of a transpose + M=1 MXU pass.
    qx = qx_ref[...].reshape(1, 1, H)
    s = jnp.sum(kx3 * qx, axis=-1)                    # (Bt, KL)

    # Numerically stable softmax over k_len. Strictly per-row, so garbage in
    # ragged-boundary rows never contaminates valid rows.
    m = jnp.max(s, axis=-1, keepdims=True)
    e = jnp.exp(s - m)
    denom = jnp.sum(e, axis=-1, keepdims=True)
    score = e * pl.reciprocal(denom, approx=False)    # exact: score is an output

    # Attention-weighted sum of kx (q_len == 1 -> multiply + sublane reduce).
    ctx = jnp.sum(score[:, :, None] * kx3, axis=1)    # (Bt, H)

    # Output projection: one MXU matmul per tile.
    out = jnp.dot(ctx, wp_ref[...], preferred_element_type=jnp.float32) + bp_ref[...]

    # Merged [out | score] block: a single write-back DMA per tile.
    o_ref[:, :OD] = out.astype(o_ref.dtype)
    o_ref[:, OD:OD + KL] = score.astype(o_ref.dtype)


def _pick_batch_tile(B, KL, E, H, OD, *, vmem_budget_bytes=24 << 20, max_tile=2048):
    """Size the batch tile so the double-buffered k stream + fp32 temporaries
    fill (but don't overflow) scoped VMEM. The kernel is HBM-bound on k
    (~2H/4 flops/byte), so bigger tiles => fewer grid steps => closer to the
    HBM roofline."""
    per_row = 4 * (2 * KL * E               # k block, double-buffered
                   + 2 * KL * H + KL + H    # kx3 / score*kx3 / score / ctx temporaries
                   + 2 * (OD + KL))         # merged output block, double-buffered
    bt = max(32, min(max_tile, vmem_budget_bytes // max(per_row, 1)))
    bt = (bt // 32) * 32                    # Bt*KL aligned to 256 (v6e/v7x) / 128 (v5e)
    if B > bt:
        return bt
    if B >= 64:
        # Keep >= 2 "parallel" grid steps so both v7x TensorCores get work.
        return min(bt, max(32, ((B // 2 + 31) // 32) * 32))
    return B                                # tiny batch: one exact block, no padding


def no_query_attention(k, q, wk, bk, wq, bq, wp, bp, *, batch_tile=None):
    """k: (B, k_len, E); q: (1, E); weights pre-transposed to (in, out) layout."""
    B, KL, E = k.shape
    QL = q.shape[0]
    assert QL == 1, "kernel specialized for NoQueryAttention default q_len=1"
    H = wk.shape[1]
    OD = wp.shape[1]

    # Batch-invariant query projection hoisted out of the per-tile path.
    qx = (jnp.dot(q, wq) + bq).astype(jnp.float32)    # (1, H)

    if batch_tile is None:
        Bt = _pick_batch_tile(B, KL, E, H, OD)
    else:
        Bt = int(batch_tile)
    Bt = min(Bt, max(B, 1))
    if Bt < B:
        Bt = max(8, (Bt // 8) * 8)          # keep output block sublane-aligned

    grid = (pl.cdiv(B, Bt),)                # ragged last block handled by Pallas

    grid_spec = pltpu.PrefetchScalarGridSpec(
        num_scalar_prefetch=0,
        grid=grid,
        in_specs=[
            pl.BlockSpec((Bt, KL, E), lambda b: (b, 0, 0)),   # k (batch-tiled HBM stream)
            pl.BlockSpec((1, H), lambda b: (0, 0)),           # qx (shared)
            pl.BlockSpec((E, H), lambda b: (0, 0)),           # Wk^T
            pl.BlockSpec((1, H), lambda b: (0, 0)),           # bk
            pl.BlockSpec((H, OD), lambda b: (0, 0)),          # Wp^T
            pl.BlockSpec((1, OD), lambda b: (0, 0)),          # bp
        ],
        out_specs=pl.BlockSpec((Bt, OD + KL), lambda b: (b, 0)),  # merged [out | score]
    )

    flops = (2 * B * KL * E * H      # key projection
             + 4 * B * KL * H        # score + context multiply-reduce
             + 2 * B * H * OD)       # output projection
    bytes_accessed = 4 * (B * KL * E + H + E * H + H + H * OD + OD + B * (OD + KL))

    merged = pl.pallas_call(
        _attention_kernel,
        out_shape=jax.ShapeDtypeStruct((B, OD + KL), jnp.float32),
        grid_spec=grid_spec,
        compiler_params=pltpu.CompilerParams(
            dimension_semantics=("parallel",),
            vmem_limit_bytes=32 * 1024 * 1024,   # raise v5e's 16 MiB default scoped VMEM
        ),
        cost_estimate=pl.CostEstimate(
            flops=flops, transcendentals=B * KL, bytes_accessed=bytes_accessed),
    )(k, qx, wk, bk, wp, bp)

    # Restore the module's output shapes: (B, q_len, out_dim), (B, q_len, k_len).
    out = merged[:, :OD].reshape(B, QL, OD)
    score = merged[:, OD:].reshape(B, QL, KL)
    return out, score


def _reference(k, q, wk, bk, wq, bq, wp, bp):
    kx = k @ wk + bk                                   # (B, KL, H)
    qx = q @ wq + bq                                   # (QL, H)
    s = jnp.einsum('qh,bkh->bqk', qx, kx)              # (B, QL, KL)
    score = jax.nn.softmax(s, axis=-1)
    ctx = jnp.einsum('bqk,bkh->bqh', score, kx)
    out = ctx @ wp + bp
    return out, score


if __name__ == "__main__":
    # Module hyper-parameters (NoQueryAttention defaults)
    embed_dim = 32
    n_head = 1
    hidden_dim = embed_dim // n_head   # 32
    out_dim = embed_dim                # 32
    q_len = 1

    key = jax.random.PRNGKey(0)
    kk, kwk, kbk, kwq, kbq, kwp, kbp, kqp, kk2 = jax.random.split(key, 9)

    # Deterministic parameter init (mimicking nn.Linear / uniform init ranges).
    lin_bound = 1.0 / math.sqrt(embed_dim)
    wk = jax.random.uniform(kwk, (embed_dim, n_head * hidden_dim),
                            minval=-lin_bound, maxval=lin_bound, dtype=jnp.float32)
    bk = jax.random.uniform(kbk, (1, n_head * hidden_dim),
                            minval=-lin_bound, maxval=lin_bound, dtype=jnp.float32)
    wq = jax.random.uniform(kwq, (embed_dim, n_head * hidden_dim),
                            minval=-lin_bound, maxval=lin_bound, dtype=jnp.float32)
    bq = jax.random.uniform(kbq, (1, n_head * hidden_dim),
                            minval=-lin_bound, maxval=lin_bound, dtype=jnp.float32)
    proj_bound = 1.0 / math.sqrt(n_head * hidden_dim)
    wp = jax.random.uniform(kwp, (n_head * hidden_dim, out_dim),
                            minval=-proj_bound, maxval=proj_bound, dtype=jnp.float32)
    bp = jax.random.uniform(kbp, (1, out_dim),
                            minval=-proj_bound, maxval=proj_bound, dtype=jnp.float32)
    q_param = jax.random.uniform(kqp, (q_len, embed_dim),
                                 minval=-lin_bound, maxval=lin_bound, dtype=jnp.float32)

    # --- primary small-shape check (B=2, k_len=8): single exact block ---
    B, k_len = 2, 8
    k = jax.random.normal(kk, (B, k_len, embed_dim), dtype=jnp.float32)

    out, score = no_query_attention(k, q_param, wk, bk, wq, bq, wp, bp)
    out = jax.block_until_ready(out)
    score = jax.block_until_ready(score)

    out_ref, score_ref = _reference(k, q_param, wk, bk, wq, bq, wp, bp)
    assert out.shape == (B, q_len, out_dim)
    assert score.shape == (B, q_len, k_len)
    assert jnp.allclose(out, out_ref, atol=1e-5, rtol=1e-5)
    assert jnp.allclose(score, score_ref, atol=1e-5, rtol=1e-5)

    # --- secondary check: multi-step grid with a ragged last block (B=100) ---
    B2 = 100
    k2 = jax.random.normal(kk2, (B2, k_len, embed_dim), dtype=jnp.float32)
    out2, score2 = no_query_attention(k2, q_param, wk, bk, wq, bq, wp, bp)
    out2 = jax.block_until_ready(out2)
    score2 = jax.block_until_ready(score2)
    out2_ref, score2_ref = _reference(k2, q_param, wk, bk, wq, bq, wp, bp)
    assert out2.shape == (B2, q_len, out_dim)
    assert score2.shape == (B2, q_len, k_len)
    assert jnp.allclose(out2, out2_ref, atol=1e-4, rtol=1e-4)
    assert jnp.allclose(score2, score2_ref, atol=1e-4, rtol=1e-4)

    print("KERNEL_OK")
</pallas_src>

<mosaic_0001>
module attributes {stable_mosaic.version = 11 : i64} {
  func.func @_attention_kernel(%arg0: i32, %arg1: memref<2x8x32xf32, #tpu.memory_space<vmem>>, %arg2: memref<1x32xf32, #tpu.memory_space<vmem>>, %arg3: memref<32x32xf32, #tpu.memory_space<vmem>>, %arg4: memref<1x32xf32, #tpu.memory_space<vmem>>, %arg5: memref<32x32xf32, #tpu.memory_space<vmem>>, %arg6: memref<1x32xf32, #tpu.memory_space<vmem>>, %arg7: memref<2x40xf32, #tpu.memory_space<vmem>>) attributes {dimension_semantics = [#tpu.dimension_semantics<parallel>], iteration_bounds = array<i64: 1>, scalar_prefetch = 0 : i64, scratch_operands = 0 : i64, tpu.core_type = #tpu.core_type<tc>, window_params = [{transform_indices = @transform_0, window_bounds = array<i64: 2, 8, 32>}, {pipeline_mode = #tpu.pipeline_mode<synchronous>, transform_indices = @transform_1, window_bounds = array<i64: 1, 32>}, {pipeline_mode = #tpu.pipeline_mode<synchronous>, transform_indices = @transform_2, window_bounds = array<i64: 32, 32>}, {pipeline_mode = #tpu.pipeline_mode<synchronous>, transform_indices = @transform_3, window_bounds = array<i64: 1, 32>}, {pipeline_mode = #tpu.pipeline_mode<synchronous>, transform_indices = @transform_4, window_bounds = array<i64: 32, 32>}, {pipeline_mode = #tpu.pipeline_mode<synchronous>, transform_indices = @transform_5, window_bounds = array<i64: 1, 32>}, {transform_indices = @transform_6, window_bounds = array<i64: 2, 40>}]} {
    %c0 = arith.constant 0 : index
    %c0_0 = arith.constant 0 : index
    %c0_1 = arith.constant 0 : index
    %0 = vector.load %arg1[%c0, %c0_0, %c0_1] : memref<2x8x32xf32, #tpu.memory_space<vmem>>, vector<2x8x32xf32>
    %1 = vector.shape_cast %0 : vector<2x8x32xf32> to vector<16x32xf32>
    %c0_2 = arith.constant 0 : index
    %c0_3 = arith.constant 0 : index
    %2 = vector.load %arg3[%c0_2, %c0_3] : memref<32x32xf32, #tpu.memory_space<vmem>>, vector<32x32xf32>
    %cst = arith.constant dense<0.000000e+00> : vector<16x32xf32>
    %3 = tpu.matmul %1, %2, %cst {dimension_numbers = #tpu.dot_dimension_numbers<[1], [0], [0], [1], [0, 0, 1, 1], [], []>} : vector<16x32xf32>, vector<32x32xf32>, vector<16x32xf32> -> vector<16x32xf32>
    %c0_4 = arith.constant 0 : index
    %c0_5 = arith.constant 0 : index
    %4 = vector.load %arg4[%c0_4, %c0_5] : memref<1x32xf32, #tpu.memory_space<vmem>>, vector<1x32xf32>
    %5 = vector.broadcast %4 : vector<1x32xf32> to vector<16x32xf32>
    %6 = arith.addf %3, %5 : vector<16x32xf32>
    %7 = vector.shape_cast %6 : vector<16x32xf32> to vector<2x8x32xf32>
    %c0_6 = arith.constant 0 : index
    %c0_7 = arith.constant 0 : index
    %8 = vector.load %arg2[%c0_6, %c0_7] : memref<1x32xf32, #tpu.memory_space<vmem>>, vector<1x32xf32>
    %9 = vector.shape_cast %8 : vector<1x32xf32> to vector<1x1x32xf32>
    %10 = vector.broadcast %9 : vector<1x1x32xf32> to vector<2x8x32xf32>
    %11 = arith.mulf %7, %10 : vector<2x8x32xf32>
    %cst_8 = arith.constant dense<0.000000e+00> : vector<2x8xf32>
    %12 = vector.multi_reduction <add>, %11, %cst_8 [2] : vector<2x8x32xf32> to vector<2x8xf32>
    %cst_9 = arith.constant dense<0xFF800000> : vector<2xf32>
    %13 = vector.multi_reduction <maximumf>, %12, %cst_9 [1] : vector<2x8xf32> to vector<2xf32>
    %14 = vector.shape_cast %13 : vector<2xf32> to vector<2x1xf32>
    %15 = vector.broadcast %14 : vector<2x1xf32> to vector<2x8xf32>
    %16 = arith.subf %12, %15 : vector<2x8xf32>
    %17 = math.exp %16 : vector<2x8xf32>
    %cst_10 = arith.constant dense<0.000000e+00> : vector<2xf32>
    %18 = vector.multi_reduction <add>, %17, %cst_10 [1] : vector<2x8xf32> to vector<2xf32>
    %19 = vector.shape_cast %18 : vector<2xf32> to vector<2x1xf32>
    %20 = tpu.reciprocal %19 : vector<2x1xf32> -> vector<2x1xf32>
    %21 = vector.broadcast %20 : vector<2x1xf32> to vector<2x8xf32>
    %22 = arith.mulf %17, %21 : vector<2x8xf32>
    %23 = vector.shape_cast %22 : vector<2x8xf32> to vector<2x8x1xf32>
    %24 = vector.broadcast %23 : vector<2x8x1xf32> to vector<2x8x32xf32>
    %25 = arith.mulf %24, %7 : vector<2x8x32xf32>
    %cst_11 = arith.constant dense<0.000000e+00> : vector<2x32xf32>
    %26 = vector.multi_reduction <add>, %25, %cst_11 [1] : vector<2x8x32xf32> to vector<2x32xf32>
    %c0_12 = arith.constant 0 : index
    %c0_13 = arith.constant 0 : index
    %27 = vector.load %arg5[%c0_12, %c0_13] : memref<32x32xf32, #tpu.memory_space<vmem>>, vector<32x32xf32>
    %cst_14 = arith.constant dense<0.000000e+00> : vector<2x32xf32>
    %28 = tpu.matmul %26, %27, %cst_14 {dimension_numbers = #tpu.dot_dimension_numbers<[1], [0], [0], [1], [0, 0, 1, 1], [], []>} : vector<2x32xf32>, vector<32x32xf32>, vector<2x32xf32> -> vector<2x32xf32>
    %c0_15 = arith.constant 0 : index
    %c0_16 = arith.constant 0 : index
    %29 = vector.load %arg6[%c0_15, %c0_16] : memref<1x32xf32, #tpu.memory_space<vmem>>, vector<1x32xf32>
    %30 = vector.broadcast %29 : vector<1x32xf32> to vector<2x32xf32>
    %31 = arith.addf %28, %30 : vector<2x32xf32>
    %c0_17 = arith.constant 0 : index
    %c0_18 = arith.constant 0 : index
    %32 = vector.load %arg7[%c0_17, %c0_18] : memref<2x40xf32, #tpu.memory_space<vmem>>, vector<2x32xf32>
    tpu.vector_store %arg7[%c0_17, %c0_18], %31 {strides = array<i32>} : memref<2x40xf32, #tpu.memory_space<vmem>>, vector<2x32xf32>,
    %c0_19 = arith.constant 0 : index
    %c32 = arith.constant 32 : index
    %33 = vector.load %arg7[%c0_19, %c32] : memref<2x40xf32, #tpu.memory_space<vmem>>, vector<2x8xf32>
    tpu.vector_store %arg7[%c0_19, %c32], %22 {strides = array<i32>} : memref<2x40xf32, #tpu.memory_space<vmem>>, vector<2x8xf32>,
    return
  }
  func.func @transform_0(%arg0: i32) -> (i32, i32, i32) {
    %c0_i32 = arith.constant 0 : i32
    %c0_i32_0 = arith.constant 0 : i32
    %c0_i32_1 = arith.constant 0 : i32
    return %arg0, %c0_i32, %c0_i32_0 : i32, i32, i32
  }
  func.func @transform_1(%arg0: i32) -> (i32, i32) {
    %c0_i32 = arith.constant 0 : i32
    %c0_i32_0 = arith.constant 0 : i32
    %c0_i32_1 = arith.constant 0 : i32
    return %c0_i32, %c0_i32_0 : i32, i32
  }
  func.func @transform_2(%arg0: i32) -> (i32, i32) {
    %c0_i32 = arith.constant 0 : i32
    %c0_i32_0 = arith.constant 0 : i32
    %c0_i32_1 = arith.constant 0 : i32
    return %c0_i32, %c0_i32_0 : i32, i32
  }
  func.func @transform_3(%arg0: i32) -> (i32, i32) {
    %c0_i32 = arith.constant 0 : i32
    %c0_i32_0 = arith.constant 0 : i32
    %c0_i32_1 = arith.constant 0 : i32
    return %c0_i32, %c0_i32_0 : i32, i32
  }
  func.func @transform_4(%arg0: i32) -> (i32, i32) {
    %c0_i32 = arith.constant 0 : i32
    %c0_i32_0 = arith.constant 0 : i32
    %c0_i32_1 = arith.constant 0 : i32
    return %c0_i32, %c0_i32_0 : i32, i32
  }
  func.func @transform_5(%arg0: i32) -> (i32, i32) {
    %c0_i32 = arith.constant 0 : i32
    %c0_i32_0 = arith.constant 0 : i32
    %c0_i32_1 = arith.constant 0 : i32
    return %c0_i32, %c0_i32_0 : i32, i32
  }
  func.func @transform_6(%arg0: i32) -> (i32, i32) {
    %c0_i32 = arith.constant 0 : i32
    %c0_i32_0 = arith.constant 0 : i32
    return %arg0, %c0_i32 : i32, i32
  }
}

</mosaic_0001>

<bundles_post_ra>
// kernel: tpu_custom_call.1
= control target key start
LH: loop header
LB: loop body
LE: loop exit
PB: predicated region body
PF: predicated region fallthrough
CT: control target
= control target key end

     0   :  { %11 = vsyncpa [#allocation3], 0  ;;  %s524_s0 = inlined_call_operand.hbm [shape: f32[2,8,32], index: 0, kind: input, shape index: {}]   ;;  %s525_s1 = inlined_call_operand.hbm [shape: f32[1,32], index: 1, kind: input, shape index: {}]   ;;  %s526_s2 = inlined_call_operand.hbm [shape: f32[32,32], index: 2, kind: input, shape index: {}]   ;;  %s527_s3 = inlined_call_operand.vmem [shape: f32[1,32], index: 3, kind: input, shape index: {}]   ;;  %s528_s4 = inlined_call_operand.hbm [shape: f32[32,32], index: 4, kind: input, shape index: {}]   ;;  %s529_s5 = inlined_call_operand.vmem [shape: f32[1,32], index: 5, kind: input, shape index: {}]   ;;  %s530_s6 = inlined_call_operand.hbm [shape: f32[2,40], index: 6, kind: output, shape index: {}]  }
   0x1   :  { %12 = vsyncpa [#allocation6], 0 }
   0x2   :  { %13 = vsyncpa [#allocation9], 0  ;;  %s33_s23 = sshll.u32 %s525_s1, 4  ;;  %s34_s23 = int_to_ptr.hbm [resolvable:$true] %s33_s23 }
   0x3   :  { %14 = vsyncpa [#allocation4], 0  ;;  %s439_s24 = smov [#allocation5]   ;;  %s19_s28 = sshll.u32 %s524_s0, 4  ;;  %s20_s28 = int_to_ptr.hbm [resolvable:$true] %s19_s28 }
   0x4   :  { %s35_s25 = sshll.u32 %s439_s24, 4  ;;  %s440_s29 = smov [#allocation2]   ;;  %s36_s25 = int_to_ptr.vmem [resolvable:$true] %s35_s25 }
   0x5   :  { %38 = dma.hbm_to_vmem [thread:$0]  %s34_s23, 16, %s36_s25, [#allocation6]  }
   0x6   :  { %s21_s30 = sshll.u32 %s440_s29, 4  ;;  %s441_s7 = smov 128   ;;  %s22_s30 = int_to_ptr.vmem [resolvable:$true] %s21_s30 }
   0x7   :  { %s442_s8 = smov 8   ;;  %s43_s1 = sshll.u32 %s526_s2, 4  ;;  %s44_s1 = int_to_ptr.hbm [resolvable:$true] %s43_s1 }
   0x8   :  { %27 = dma.hbm_to_vmem [thread:$0]  %s20_s28, 256, %s22_s30, [#allocation3], %s441_s7, %s441_s7, %s442_s8  }
   0x9   :  { %s443_s11 = smov [#allocation7]   ;;  %s58_s0 = sshll.u32 %s528_s4, 4  ;;  %s59_s0 = int_to_ptr.hbm [resolvable:$true] %s58_s0 }
   0xa   :  { %s45_s12 = sshll.u32 %s443_s11, 4  ;;  %s444_s15 = smov [#allocation8]   ;;  %s46_s12 = int_to_ptr.vmem [resolvable:$true] %s45_s12 }
   0xb   :  { %51 = dma.hbm_to_vmem [thread:$0]  %s44_s1, 512, %s46_s12, [#allocation6], %s441_s7, %s441_s7, %s442_s8  }
   0xc   :  { %s60_s16 = sshll.u32 %s444_s15, 4  ;;  %s61_s16 = int_to_ptr.vmem [resolvable:$true] %s60_s16 }
   0xd   :  { %66 = dma.hbm_to_vmem [thread:$0]  %s59_s0, 512, %s61_s16, [#allocation9], %s441_s7, %s441_s7, %s442_s8  }
   0xe   :  { %431 = dma.done.wait [#allocation3], 256  }
   0xf   :  { %432 = vsyncadd [#allocation3], 4294967040 }
  0x10   :  { %433 = dma.done.wait [#allocation6], 528  }
  0x11   :  { %434 = vsyncadd [#allocation6], 4294966768 }
  0x12   :  { %435 = dma.done.wait [#allocation9], 512  }
  0x13   :  { %436 = vsyncadd [#allocation9], 4294966784  ;;  %v90_v0 = vld [vmem:[#allocation7 + $0x18] sm:$0xff]  ;;  %v89_v1 = vld [vmem:[#allocation7 + $0x10] sm:$0xff]  ;;  %vm95_vm0 = vcmask 261120   ;;  %v139_v17 = vlaneseq  ;;  %vm143_vm1 = vcmask 1041409  }
  0x14   :  { %114 = vmatpush.msra.mxu0 %v90_v0  ;;  %287 = vmatpush.msra.mxu2 %v90_v0  ;;  %v88_v2 = vld [vmem:[#allocation7 + $0x8] sm:$0xff]  ;;  %v87_v3 = vld [vmem:[#allocation7] sm:$0xff]  ;;  %v86_v5 = vld [vmem:[#allocation2 + $0x8] sm:$0xff]  ;;  %vm146_vm2 = vcmask 58368   ;;  %v445_v24 = vmov 0   ;;  %s446_s18 = smov [#allocation10]  }
  0x15   :  { %v85_v4 = vld [vmem:[#allocation2] sm:$0xff]  ;;  %v303_v7 = vld [vmem:[#allocation5] ss:$0 sm:$0xff]  ;;  %v140_v18 = vand.u32 127, %v139_v17  ;;  %300 = vset.pattern.permute.xlu2 %v445_v24  ;;  %299 = vset.pattern.permute.xlu1 %v445_v24  ;;  %v223_v58 = vld [vmem:[#allocation8] sm:$0xff]  ;;  %s270_s19 = sshll.u32 %s446_s18, 4  ;;  %s271_s19 = int_to_ptr.vmem [resolvable:$true] %s270_s19 }
  0x16   :  { %115 = vmatpush.msra.mxu0 %v89_v1  ;;  %288 = vmatpush.msra.mxu2 %v89_v1  ;;  %v302_v6 = vld [vmem:[%s527_s3] ss:$0 sm:$0xff]  ;;  %v226_v55 = vld [vmem:[#allocation8 + $0x18] sm:$0xff]  ;;  %v225_v56 = vld [vmem:[#allocation8 + $0x10] sm:$0xff]  ;;  %s272_s22 = sshll.u32 %s530_s6, 4  ;;  %vm256_vm7 = vcmask 254976   ;;  %s273_s22 = int_to_ptr.hbm [resolvable:$true] %s272_s22 }
  0x17   :  { %301 = vset.pattern.permute.xlu0 %v445_v24  ;;  %248 = vmatpush.msra.mxu1 %v226_v55  ;;  %v224_v57 = vld [vmem:[#allocation8 + $0x8] sm:$0xff]  ;;  %v258_v59 = vadd.s32 4294967264, %v140_v18  ;;  %vm263_vm8 = vcmask 320768  }
  0x18   :  { %116 = vmatpush.msra.mxu0 %v88_v2  ;;  %289 = vmatpush.msra.mxu2 %v88_v2 }
  0x19   :  { %249 = vmatpush.msra.mxu1 %v225_v56 }
  0x1a   :  { %117 = vmatpush.msra.mxu0 %v87_v3  ;;  %290 = vmatpush.msra.mxu2 %v87_v3 }
  0x1b   :  { %284 = vmatmul.msk.f32.vlgmr.msra.gmra.mxu0 %vm95_vm0, %v85_v4  ;;  %285 = vmatmul.msk.f32.vlgmr.msra.gmra.mxu2 %vm95_vm0, %v86_v5 }
  0x1c   :  { %250 = vmatpush.msra.mxu1 %v224_v57 }
  0x1e   :  { %251 = vmatpush.msra.mxu1 %v223_v58 }
  0x98   :  { %v119_v8 = vpop.f32.mrf.mxu0 }
  0x99   :  { %v499_v9 = vadd.f32 %v302_v6, %v119_v8 }
  0x9b   :  { %v129_v10 = vmul.f32 %v303_v7, %v499_v9 }
  0x9d   :  { %v131_v11 = vsel %vm95_vm0, %v129_v10, 0.0 }
  0x9e   :  { %132 = vadd.xlane.f32.xlu0 %v131_v11  ;;  %v122_v12 = vpop.f32.mrf.mxu2 }
  0x9f   :  { %v503_v13 = vadd.f32 %v302_v6, %v122_v12 }
  0xa1   :  { %v130_v14 = vmul.f32 %v303_v7, %v503_v13 }
  0xa3   :  { %v134_v15 = vsel %vm95_vm0, %v130_v14, 0.0 }
  0xa6   :  { %135 = vadd.xlane.f32.xlu0 %v134_v15 }
 0x111   :  { %v133_v16 = vpop.xlane.xlu0 %132 }
 0x112   :  { %v141_v20 = vperm.slane %v133_v16, %v140_v18 }
 0x119   :  { %v136_v19 = vpop.xlane.xlu0 %135 }
 0x11a   :  { %v142_v21 = vperm.slane %v136_v19, %v140_v18 }
 0x11c   :  { %v144_v22 = vsel %vm143_vm1, %v142_v21, %v141_v20 }
 0x11d   :  { %v147_v23 = vsel %vm146_vm2, %v144_v22, -inf }
 0x11e   :  { %148 = vmax.xlane.f32.xlu1 %v147_v23 }
 0x191   :  { %v149_v25 = vpop.xlane.xlu1 %148 }
 0x192   :  { %v151_v26 = vperm.slane %v149_v25, 0  ;;  %v152_v27 = vperm.slane %v149_v25, 1 }
 0x194   :  { %v155_v28 = vsub.f32 %v133_v16, %v151_v26  ;;  %v156_v29 = vsub.f32 %v136_v19, %v152_v27 }
 0x196   :  { %v157_v30 = vmul.f32 1.442695, %v155_v28  ;;  %v159_v31 = vmul.f32 1.442695, %v156_v29 }
 0x198   :  { %305 = vpow2.f32 %v157_v30 }
 0x199   :  { %307 = vpow2.f32 %v159_v31 }
 0x19e   :  { %v306_v32 = vpop.eup %305 }
 0x19f   :  { %v308_v33 = vpop.eup %307  ;;  %164 = vperm.xlu1 %299, %v306_v32  }
 0x1a0   :  { %167 = vperm.xlu2 %300, %v308_v33  }
 0x1fa   :  { %v168_v34 = vpop.permute.xlu2 %167 }
 0x1fb   :  { %v170_v36 = vperm.slane %v168_v34, %v140_v18 }
 0x211   :  { %v165_v35 = vpop.permute.xlu1 %164 }
 0x212   :  { %v169_v37 = vperm.slane %v165_v35, %v140_v18  ;;  %v304_v18 = vld [vmem:[%s529_s5] ss:$0 sm:$0xff] }
 0x214   :  { %v171_v38 = vsel %vm143_vm1, %v170_v36, %v169_v37 }
 0x215   :  { %v173_v39 = vsel %vm146_vm2, %v171_v38, 0.0 }
 0x216   :  { %174 = vadd.xlane.f32.xlu2 %v173_v39 }
 0x289   :  { %v175_v40 = vpop.xlane.xlu2 %174 }
 0x28a   :  { %309 = vrcp.f32 %v175_v40  ;;  %v187_v44 = vand.u32 2147483648, %v175_v40  ;;  %v185_v46 = vand.u32 2147483647, %v175_v40  ;;  %vm181_vm4 = vweird.f32 %v175_v40 }
 0x28c   :  { %v188_v48 = vor.u32 1.1754944e-38, %v187_v44  ;;  %vm186_vm6 = vcmp.eq.f32.partialorder %v185_v46, 8.507059e+37 }
 0x290   :  { %v310_v41 = vpop.eup %309 }
 0x291   :  { %v177_v42 = vmul.f32 %v310_v41, %v175_v40  ;;  %vm182_vm3 = vweird.f32 %v310_v41 }
 0x292   :  { %vm183_vm5 = vmor %vm181_vm4, %vm182_vm3 }
 0x293   :  { %v178_v43 = vsub.f32 1.0, %v177_v42 }
 0x295   :  { %v179_v45 = vmul.f32 %v310_v41, %v178_v43 }
 0x297   :  { %v180_v47 = vadd.f32 %v310_v41, %v179_v45 }
 0x299   :  { %v184_v49 = vsel %vm183_vm5, %v310_v41, %v180_v47 }
 0x29a   :  { %v189_v50 = vsel %vm186_vm6, %v188_v48, %v184_v49 }
 0x29b   :  { %v192_v51 = vperm.slane %v189_v50, 1  ;;  %v191_v52 = vperm.slane %v189_v50, 0 }
 0x29d   :  { %v196_v53 = vmul.f32 %v308_v33, %v192_v51  ;;  %v195_v54 = vmul.f32 %v306_v32, %v191_v52 }
 0x29f   :  { %204 = vperm.xlu1 %299, %v196_v53   ;;  %199 = vperm.xlu0 %301, %v195_v54  }
 0x311   :  { %v205_v60 = vpop.permute.xlu1 %204  ;;  %v200_v61 = vpop.permute.xlu0 %199 }
 0x312   :  { %v208_v62 = vmul.f32 %v205_v60, %v503_v13  ;;  %v260_v63 = vperm.slane %v205_v60, %v258_v59  ;;  %v207_v0 = vmul.f32 %v200_v61, %v499_v9  ;;  %v259_v1 = vperm.slane %v200_v61, %v258_v59 }
 0x314   :  { %v216_v2 = vsel %vm95_vm0, %v208_v62, 0.0  ;;  %v209_v3 = vsel %vm95_vm0, %v207_v0, 0.0  ;;  %v261_v4 = vsel %vm143_vm1, %v260_v63, %v259_v1 }
 0x315   :  { %v217_v5 = vrot.slane %v216_v2, 4  ;;  %v210_v6 = vrot.slane %v209_v3, 4 }
 0x317   :  { %v218_v7 = vadd.f32 %v217_v5, %v216_v2  ;;  %v211_v8 = vadd.f32 %v210_v6, %v209_v3 }
 0x319   :  { %v219_v10 = vrot.slane %v218_v7, 2  ;;  %v212_v11 = vrot.slane %v211_v8, 2 }
 0x31b   :  { %v220_v12 = vadd.f32 %v219_v10, %v218_v7  ;;  %v213_v14 = vadd.f32 %v212_v11, %v211_v8 }
 0x31d   :  { %v221_v15 = vrot.slane %v220_v12, 1  ;;  %v214_v13 = vrot.slane %v213_v14, 1 }
 0x31f   :  { %v215_v16 = vadd.f32 %v214_v13, %v213_v14  ;;  %v222_v17 = vadd.f32 %v221_v15, %v220_v12 }
 0x321   :  { %v233_v9 = vsel %vm143_vm1, %v222_v17, %v215_v16 }
 0x322   :  { %286 = vmatmul.msk.f32.vlgmr.msra.gmra.mxu1 %vm95_vm0, %v233_v9 }
 0x39f   :  { %v253_v19 = vpop.f32.mrf.mxu1 }
 0x3a0   :  { %v254_v20 = vadd.f32 %v304_v18, %v253_v19 }
 0x3a2   :  { %257 = vst.msk [vmem:[#allocation10] sm:$0x3] %vm256_vm7, %v254_v20 }
 0x3a3   :  { %264 = vst.msk [vmem:[#allocation10] sm:$0x3] %vm263_vm8, %v261_v4 }
 0x3a4   :  { %275 = dma.vmem_to_hbm [thread:$0]  %s271_s19, 32, %s273_s22, [#allocation4]  }
 0x3a5   :  { %437 = dma.done.wait [#allocation4], 32  }
 0x3a6   :  { %438 = vsyncadd [#allocation4], 4294967264 }
 0x3a7   :  { %280 = vsyncpa [#allocation3], 1 }
 0x3a8   :  { %281 = vsyncpa [#allocation6], 1 }
 0x3a9   :  { %282 = vsyncpa [#allocation9], 1 }
 0x3aa   :  { %283 = vsyncpa [#allocation4], 1 }

</bundles_post_ra>
